<compile_context>
chip_gen: v7x
topology: tpu7x:2x2x1
jax: 0.10.0
libtpu: 0.0.40
codegen_flags: <defaults>
</compile_context>

<pallas_src>
import functools

import jax
import jax.numpy as jnp
from jax.experimental import pallas as pl
from jax.experimental.pallas import tpu as pltpu

PAD_IDX = 0  # Constants.PAD
LANE = 128


def _textcnn_fused_kernel(x_ref, w_ref, b_ref, o_ref, *,
                          filter_sizes, n_filters, f_out_pad):
    """Fused multi-filter-size conv + max-pool (+bias+ReLU) on one batch tile.

    x_ref: (TB, L, E)         bf16  embedded activations
    w_ref: (E, sum(fs)*F)     bf16  all conv taps concatenated along columns
    b_ref: (1, F_OUT_PAD)     f32   concatenated biases, zero padded
    o_ref: (TB, F_OUT_PAD)    f32   [relu(maxpool(conv)) per size | zero pad]
    """
    tb, seq_len, embed_dim = x_ref.shape
    n_cols = w_ref.shape[-1]

    # One dense 2D MXU matmul over the FULL time axis: M = TB*L, K = E,
    # N = sum(fs)*F, accumulated in f32.
    x2d = x_ref[...].reshape(tb * seq_len, embed_dim)
    z = jnp.dot(x2d, w_ref[...], preferred_element_type=jnp.float32)
    z = z.reshape(tb, seq_len, n_cols)

    parts = []
    col = 0
    for fs in filter_sizes:
        t_out = seq_len - fs + 1
        # Conv for this filter size: shift-and-add the per-tap matmul results.
        acc = z[:, 0:t_out, col:col + n_filters]
        for k in range(1, fs):
            acc = acc + z[:, k:k + t_out,
                          col + k * n_filters: col + (k + 1) * n_filters]
        col += fs * n_filters
        parts.append(jnp.max(acc, axis=1))          # max-pool over time -> (TB, F)

    f_total = n_filters * len(filter_sizes)
    if f_out_pad > f_total:                          # lane padding (zeros)
        parts.append(jnp.zeros((tb, f_out_pad - f_total), jnp.float32))
    cat = jnp.concatenate(parts, axis=1)             # (TB, F_OUT_PAD), lane dense
    # bias + ReLU after the max-pool (identical math, far fewer VPU ops).
    o_ref[...] = jnp.maximum(cat + b_ref[...], 0.0)


def _pick_batch_tile(batch, seq_len, embed_dim, n_cols):
    """Largest batch tile whose working set fits a conservative VMEM budget."""
    lanes_x = max(embed_dim, LANE)
    lanes_z = max(n_cols, LANE)
    # per batch row: double-buffered bf16 input rows + f32 matmul result rows
    per_row = 2 * (seq_len * lanes_x * 2) + seq_len * lanes_z * 4
    budget = 8 * 1024 * 1024                         # headroom under 32 MiB scoped
    tb = max(8, budget // per_row)
    if tb >= batch:
        return batch
    return max(8, (tb // 8) * 8)                     # keep output sublane-aligned


def textcnn_pallas(x_emb, w_cat, b_pad, filter_sizes, n_filters):
    """x_emb: (B, L, E) bf16; w_cat: (E, sum(fs)*F) bf16; b_pad: (1, Fpad) f32."""
    batch, seq_len, embed_dim = x_emb.shape
    n_cols = w_cat.shape[-1]
    f_out_pad = b_pad.shape[-1]
    tb = _pick_batch_tile(batch, seq_len, embed_dim, n_cols)
    grid = (pl.cdiv(batch, tb),)

    kernel = functools.partial(
        _textcnn_fused_kernel,
        filter_sizes=tuple(filter_sizes), n_filters=n_filters,
        f_out_pad=f_out_pad)

    cost = pl.CostEstimate(
        flops=2 * batch * seq_len * embed_dim * n_cols,
        transcendentals=0,
        bytes_accessed=(x_emb.size * x_emb.dtype.itemsize
                        + w_cat.size * w_cat.dtype.itemsize
                        + b_pad.size * 4 + batch * f_out_pad * 4))

    return pl.pallas_call(
        kernel,
        out_shape=jax.ShapeDtypeStruct((batch, f_out_pad), jnp.float32),
        grid=grid,
        in_specs=[
            pl.BlockSpec((tb, seq_len, embed_dim), lambda i: (i, 0, 0)),  # batch-tiled
            pl.BlockSpec((embed_dim, n_cols), lambda i: (0, 0)),          # resident W
            pl.BlockSpec((1, f_out_pad), lambda i: (0, 0)),               # resident b
        ],
        out_specs=pl.BlockSpec((tb, f_out_pad), lambda i: (i, 0)),
        compiler_params=pltpu.CompilerParams(
            dimension_semantics=("parallel",),       # megacore sharding on v7x
            vmem_limit_bytes=32 * 1024 * 1024,       # explicit, safe on v7x 64 MiB
        ),
        cost_estimate=cost,
    )(x_emb, w_cat, b_pad)


def init_params(key, vocab_size, embed_dim, n_filters, filter_sizes):
    """Deterministic parameter init mirroring the PyTorch module's shapes."""
    keys = jax.random.split(key, 1 + 2 * len(filter_sizes))
    # nn.Embedding: N(0, 1), padding_idx row zeroed.
    emb = jax.random.normal(keys[0], (vocab_size, embed_dim), jnp.float32)
    emb = emb.at[PAD_IDX].set(0.0)
    convs = []
    for i, fs in enumerate(filter_sizes):
        fan_in = 1 * fs * embed_dim
        bound = 1.0 / (fan_in ** 0.5)
        # PyTorch Conv2d weight (F, 1, fs, E) -> stored as (fs, E, F).
        w = jax.random.uniform(keys[1 + 2 * i], (fs, embed_dim, n_filters),
                               jnp.float32, -bound, bound)
        b = jax.random.uniform(keys[2 + 2 * i], (n_filters,),
                               jnp.float32, -bound, bound)
        convs.append((w, b))
    return emb, convs


def pack_conv_params(convs, filter_sizes, n_filters):
    """(fs, E, F) per size -> w_cat (E, sum(fs)*F) bf16, b_pad (1, Fpad) f32."""
    embed_dim = convs[0][0].shape[1]
    w_cols, biases = [], []
    for (w, b), fs in zip(convs, filter_sizes):
        # (fs, E, F) -> (E, fs*F): column index = tap*F + f.
        w_cols.append(jnp.transpose(w, (1, 0, 2)).reshape(embed_dim, fs * n_filters))
        biases.append(b)
    w_cat = jnp.concatenate(w_cols, axis=1).astype(jnp.bfloat16)
    b_cat = jnp.concatenate(biases, axis=0).astype(jnp.float32)
    f_total = b_cat.shape[0]
    f_out_pad = ((f_total + LANE - 1) // LANE) * LANE
    b_pad = jnp.zeros((1, f_out_pad), jnp.float32).at[0, :f_total].set(b_cat)
    return w_cat, b_pad, f_total


def textcnn_forward(text, emb_table, convs, filter_sizes, n_filters):
    """text: (B, L) int32 -> (B, n_filters * len(filter_sizes)) f32."""
    assert text.shape[1] >= max(filter_sizes), "seq_len must be >= max filter size"
    # Embedding lookup (data-dependent gather) is glue; stays in plain JAX.
    # Feed bf16 activations to the kernel to halve HBM traffic.
    embedded = jnp.take(emb_table, text, axis=0).astype(jnp.bfloat16)   # (B, L, E)
    w_cat, b_pad, f_total = pack_conv_params(convs, filter_sizes, n_filters)
    out = textcnn_pallas(embedded, w_cat, b_pad, filter_sizes, n_filters)
    return out[:, :f_total]


if __name__ == "__main__":
    # Small, module-consistent shapes.
    vocab_size = 50
    embed_dim = 32
    n_filters = 16
    filter_sizes = (2, 3, 4)
    batch = 2
    seq_len = 8

    key = jax.random.PRNGKey(0)
    k_params, k_text = jax.random.split(key)
    emb_table, convs = init_params(k_params, vocab_size, embed_dim,
                                   n_filters, filter_sizes)
    text = jax.random.randint(k_text, (batch, seq_len), 0, vocab_size,
                              dtype=jnp.int32)

    out = textcnn_forward(text, emb_table, convs, filter_sizes, n_filters)
    out = jax.block_until_ready(out)
    assert out.shape == (batch, n_filters * len(filter_sizes)), out.shape

    # Pure-JAX reference of the fused path (same bf16 inputs, f32 accumulation).
    emb_bf = jnp.take(emb_table, text, axis=0).astype(jnp.bfloat16)
    ref_pooled = []
    for (w, b), fs in zip(convs, filter_sizes):
        t_out = seq_len - fs + 1
        wb = w.astype(jnp.bfloat16)
        acc = jnp.zeros((batch, t_out, n_filters), jnp.float32)
        for kk in range(fs):
            acc = acc + jnp.einsum("ble,ef->blf", emb_bf[:, kk:kk + t_out, :],
                                   wb[kk], preferred_element_type=jnp.float32)
        ref_pooled.append(jnp.maximum(jnp.max(acc, axis=1) + b[None, :], 0.0))
    ref = jnp.concatenate(ref_pooled, axis=1)
    assert jnp.allclose(out, ref, atol=2e-2, rtol=2e-2), (
        float(jnp.max(jnp.abs(out - ref))))

    print("KERNEL_OK")
</pallas_src>

<mosaic_0001>
module attributes {stable_mosaic.version = 11 : i64} {
  func.func @_textcnn_fused_kernel(%arg0: i32, %arg1: memref<2x8x32xbf16, #tpu.memory_space<vmem>>, %arg2: memref<32x144xbf16, #tpu.memory_space<vmem>>, %arg3: memref<1x128xf32, #tpu.memory_space<vmem>>, %arg4: memref<2x128xf32, #tpu.memory_space<vmem>>) attributes {dimension_semantics = [#tpu.dimension_semantics<parallel>], iteration_bounds = array<i64: 1>, scalar_prefetch = 0 : i64, scratch_operands = 0 : i64, tpu.core_type = #tpu.core_type<tc>, window_params = [{transform_indices = @transform_0, window_bounds = array<i64: 2, 8, 32>}, {pipeline_mode = #tpu.pipeline_mode<synchronous>, transform_indices = @transform_1, window_bounds = array<i64: 32, 144>}, {pipeline_mode = #tpu.pipeline_mode<synchronous>, transform_indices = @transform_2, window_bounds = array<i64: 1, 128>}, {transform_indices = @transform_3, window_bounds = array<i64: 2, 128>}]} {
    %c0 = arith.constant 0 : index
    %c0_0 = arith.constant 0 : index
    %c0_1 = arith.constant 0 : index
    %0 = vector.load %arg1[%c0, %c0_0, %c0_1] : memref<2x8x32xbf16, #tpu.memory_space<vmem>>, vector<2x8x32xbf16>
    %1 = vector.shape_cast %0 : vector<2x8x32xbf16> to vector<16x32xbf16>
    %c0_2 = arith.constant 0 : index
    %c0_3 = arith.constant 0 : index
    %2 = vector.load %arg2[%c0_2, %c0_3] : memref<32x144xbf16, #tpu.memory_space<vmem>>, vector<32x144xbf16>
    %cst = arith.constant dense<0.000000e+00> : vector<16x144xf32>
    %3 = tpu.matmul %1, %2, %cst {dimension_numbers = #tpu.dot_dimension_numbers<[1], [0], [0], [1], [0, 0, 1, 1], [], []>} : vector<16x32xbf16>, vector<32x144xbf16>, vector<16x144xf32> -> vector<16x144xf32>
    %4 = vector.shape_cast %3 : vector<16x144xf32> to vector<2x8x144xf32>
    %5 = vector.extract_strided_slice %4 {offsets = [0, 0, 0], sizes = [2, 7, 16], strides = [1, 1, 1]} : vector<2x8x144xf32> to vector<2x7x16xf32>
    %6 = vector.extract_strided_slice %4 {offsets = [0, 1, 16], sizes = [2, 7, 16], strides = [1, 1, 1]} : vector<2x8x144xf32> to vector<2x7x16xf32>
    %7 = arith.addf %5, %6 : vector<2x7x16xf32>
    %cst_4 = arith.constant dense<0xFF800000> : vector<2x16xf32>
    %8 = vector.multi_reduction <maximumf>, %7, %cst_4 [1] : vector<2x7x16xf32> to vector<2x16xf32>
    %9 = vector.extract_strided_slice %4 {offsets = [0, 0, 32], sizes = [2, 6, 16], strides = [1, 1, 1]} : vector<2x8x144xf32> to vector<2x6x16xf32>
    %10 = vector.extract_strided_slice %4 {offsets = [0, 1, 48], sizes = [2, 6, 16], strides = [1, 1, 1]} : vector<2x8x144xf32> to vector<2x6x16xf32>
    %11 = arith.addf %9, %10 : vector<2x6x16xf32>
    %12 = vector.extract_strided_slice %4 {offsets = [0, 2, 64], sizes = [2, 6, 16], strides = [1, 1, 1]} : vector<2x8x144xf32> to vector<2x6x16xf32>
    %13 = arith.addf %11, %12 : vector<2x6x16xf32>
    %cst_5 = arith.constant dense<0xFF800000> : vector<2x16xf32>
    %14 = vector.multi_reduction <maximumf>, %13, %cst_5 [1] : vector<2x6x16xf32> to vector<2x16xf32>
    %15 = vector.extract_strided_slice %4 {offsets = [0, 0, 80], sizes = [2, 5, 16], strides = [1, 1, 1]} : vector<2x8x144xf32> to vector<2x5x16xf32>
    %16 = vector.extract_strided_slice %4 {offsets = [0, 1, 96], sizes = [2, 5, 16], strides = [1, 1, 1]} : vector<2x8x144xf32> to vector<2x5x16xf32>
    %17 = arith.addf %15, %16 : vector<2x5x16xf32>
    %18 = vector.extract_strided_slice %4 {offsets = [0, 2, 112], sizes = [2, 5, 16], strides = [1, 1, 1]} : vector<2x8x144xf32> to vector<2x5x16xf32>
    %19 = arith.addf %17, %18 : vector<2x5x16xf32>
    %20 = vector.extract_strided_slice %4 {offsets = [0, 3, 128], sizes = [2, 5, 16], strides = [1, 1, 1]} : vector<2x8x144xf32> to vector<2x5x16xf32>
    %21 = arith.addf %19, %20 : vector<2x5x16xf32>
    %cst_6 = arith.constant dense<0xFF800000> : vector<2x16xf32>
    %22 = vector.multi_reduction <maximumf>, %21, %cst_6 [1] : vector<2x5x16xf32> to vector<2x16xf32>
    %cst_7 = arith.constant 0.000000e+00 : f32
    %23 = vector.broadcast %cst_7 : f32 to vector<2x80xf32>
    %24 = tpu.concatenate %8, %14, %22, %23 in 1 : vector<2x16xf32>, vector<2x16xf32>, vector<2x16xf32>, vector<2x80xf32> -> vector<2x128xf32>
    %c0_8 = arith.constant 0 : index
    %c0_9 = arith.constant 0 : index
    %25 = vector.load %arg3[%c0_8, %c0_9] : memref<1x128xf32, #tpu.memory_space<vmem>>, vector<1x128xf32>
    %26 = vector.broadcast %25 : vector<1x128xf32> to vector<2x128xf32>
    %27 = arith.addf %24, %26 : vector<2x128xf32>
    %cst_10 = arith.constant 0.000000e+00 : f32
    %28 = vector.broadcast %cst_10 : f32 to vector<2x128xf32>
    %29 = arith.maximumf %27, %28 : vector<2x128xf32>
    %c0_11 = arith.constant 0 : index
    %c0_12 = arith.constant 0 : index
    %30 = vector.load %arg4[%c0_11, %c0_12] : memref<2x128xf32, #tpu.memory_space<vmem>>, vector<2x128xf32>
    tpu.vector_store %arg4[%c0_11, %c0_12], %29 {strides = array<i32>} : memref<2x128xf32, #tpu.memory_space<vmem>>, vector<2x128xf32>,
    return
  }
  func.func @transform_0(%arg0: i32) -> (i32, i32, i32) {
    %c0_i32 = arith.constant 0 : i32
    %c0_i32_0 = arith.constant 0 : i32
    %c0_i32_1 = arith.constant 0 : i32
    return %arg0, %c0_i32, %c0_i32_0 : i32, i32, i32
  }
  func.func @transform_1(%arg0: i32) -> (i32, i32) {
    %c0_i32 = arith.constant 0 : i32
    %c0_i32_0 = arith.constant 0 : i32
    %c0_i32_1 = arith.constant 0 : i32
    return %c0_i32, %c0_i32_0 : i32, i32
  }
  func.func @transform_2(%arg0: i32) -> (i32, i32) {
    %c0_i32 = arith.constant 0 : i32
    %c0_i32_0 = arith.constant 0 : i32
    %c0_i32_1 = arith.constant 0 : i32
    return %c0_i32, %c0_i32_0 : i32, i32
  }
  func.func @transform_3(%arg0: i32) -> (i32, i32) {
    %c0_i32 = arith.constant 0 : i32
    %c0_i32_0 = arith.constant 0 : i32
    return %arg0, %c0_i32 : i32, i32
  }
}

</mosaic_0001>

<bundles_post_ra>
// kernel: tpu_custom_call.1
= control target key start
LH: loop header
LB: loop body
LE: loop exit
PB: predicated region body
PF: predicated region fallthrough
CT: control target
= control target key end

     0   :  { %8 = vsyncpa [#allocation3], 0  ;;  %s426_s0 = inlined_call_operand.hbm [shape: bf16[2,8,32], index: 0, kind: input, shape index: {}]   ;;  %s427_s1 = inlined_call_operand.hbm [shape: bf16[32,144], index: 1, kind: input, shape index: {}]   ;;  %s428_s2 = inlined_call_operand.vmem [shape: f32[1,128], index: 2, kind: input, shape index: {}]   ;;  %s429_s3 = inlined_call_operand.hbm [shape: f32[2,128], index: 3, kind: output, shape index: {}]  }
   0x1   :  { %9 = vsyncpa [#allocation6], 0 }
   0x2   :  { %10 = vsyncpa [#allocation4], 0  ;;  %s346_s12 = smov [#allocation2]   ;;  %s274_s16 = scalar_lea.hbm %s426_s0, 128 }
   0x3   :  { %s16_s13 = sshll.u32 %s346_s12, 4  ;;  %p275_p0 = scmp.ne.s32.totalorder %s426_s0, %s274_s16  ;;  %s17_s13 = int_to_ptr.vmem [resolvable:$true] %s16_s13 }
   0x4   :  { %p278_p1 = scmp.lt.u32.totalorder %s274_s16, %s426_s0 }
   0x6   :  { %p280_p2 = pnand %p278_p1, %p275_p0 }
   0x8   :  { %283 = shalt.err (!%p280_p2)
}
   0x9   :  { %s284_s21 = scalar_lea.vmem %s17_s13, 128  ;;  %p289_p4 = scmp.lt.s32.totalorder %s17_s13, %s17_s13 }
   0xa   :  { %p285_p3 = scmp.ne.s32.totalorder %s17_s13, %s284_s21  ;;  %p290_p5 = scmp.lt.s32.totalorder %s284_s21, %s284_s21 }
   0xc   :  { %p291_p6 = por %p290_p5, %p289_p4 }
   0xe   :  { %p292_p7 = pnand %p291_p6, %p285_p3 }
  0x10   :  { %295 = shalt.err (!%p292_p7)
}
  0x11   :  { %s347_s22 = smov 64   ;;  %s348_s23 = smov 4  }
  0x12   :  { %22 = dma.hbm_to_vmem [thread:$0]  %s426_s0, 128, %s17_s13, [#allocation3], %s347_s22, %s347_s22, %s348_s23  }
  0x13   :  { %s349_s26 = smov [#allocation5]   ;;  %s296_s30 = scalar_lea.hbm %s427_s1, 512 }
  0x14   :  { %s28_s27 = sshll.u32 %s349_s26, 4  ;;  %p297_p8 = scmp.ne.s32.totalorder %s427_s1, %s296_s30  ;;  %s29_s27 = int_to_ptr.vmem [resolvable:$true] %s28_s27 }
  0x15   :  { %p300_p9 = scmp.lt.u32.totalorder %s296_s30, %s427_s1 }
  0x17   :  { %p302_p10 = pnand %p300_p9, %p297_p8 }
  0x19   :  { %305 = shalt.err (!%p302_p10)
}
  0x1a   :  { %s306_s8 = scalar_lea.vmem %s29_s27, 512  ;;  %p311_p12 = scmp.lt.s32.totalorder %s29_s27, %s29_s27 }
  0x1b   :  { %p307_p11 = scmp.ne.s32.totalorder %s29_s27, %s306_s8  ;;  %p312_p13 = scmp.lt.s32.totalorder %s306_s8, %s306_s8 }
  0x1d   :  { %p313_p0 = por %p312_p13, %p311_p12 }
  0x1f   :  { %p314_p1 = pnand %p313_p0, %p307_p11 }
  0x21   :  { %317 = shalt.err (!%p314_p1)
}
  0x22   :  { %s350_s0 = smov 128   ;;  %s351_s9 = smov 8  }
  0x23   :  { %34 = dma.hbm_to_vmem [thread:$0]  %s427_s1, 512, %s29_s27, [#allocation6], %s350_s0, %s350_s0, %s351_s9  }
  0x24   :  { %340 = dma.done.wait [#allocation3], 128  }
  0x25   :  { %341 = vsyncadd [#allocation3], 4294967168 }
  0x26   :  { %342 = dma.done.wait [#allocation6], 512  }
  0x27   :  { %343 = vsyncadd [#allocation6], 4294966784  ;;  %v352_v0 = vmov 0   ;;  %v267_v1 = vld [vmem:[#allocation5 + $0x4] ss:$8 sps:$4 sm:$0xff]   ;;  %v273_v5 = vld [vmem:[#allocation2] sm:$0xff]  }
  0x28   :  { %111 = vmatprep.mubr.bf16.mxu0 %v352_v0  ;;  %v269_v2 = vld [vmem:[#allocation5] ss:$8 sps:$4 sm:$0xff]   ;;  %79 = vmatprep.subr.bf16.mxu0 %v267_v1  ;;  %v270_v3 = vld [vmem:[#allocation5 + $0x14] ss:$8 sps:$4 sm:$0xff]   ;;  %v272_v4 = vld [vmem:[#allocation5 + $0x10] ss:$8 sps:$4 sm:$0xff]  }
  0x29   :  { %80 = vmatpush1.bf16.msra.mxu0 %v269_v2  ;;  %vm75_vm0 = vcmask 261120   ;;  %s353_s1 = smov 96   ;;  %s354_s12 = smov 112   ;;  %vm134_vm1 = vcmask 129024   ;;  %vm159_vm2 = vcmask 390400   ;;  %vm186_vm3 = vcmask 782976  }
  0x2a   :  { %81 = vmatprep.subr.bf16.mxu0 %v270_v3  ;;  %s355_s13 = smov 80   ;;  %vm203_vm4 = vcmask 1041409   ;;  %vm218_vm5 = vcmask 130048   ;;  %vm221_vm6 = vcmask 392192   ;;  %s356_s16 = smov [#allocation7]  }
  0x2b   :  { %s239_s17 = sshll.u32 %s356_s16, 4  ;;  %s240_s17 = int_to_ptr.vmem [resolvable:$true] %s239_s17 }
  0x2c   :  { %s318_s18 = scalar_lea.vmem %s240_s17, 32  ;;  %p323_p3 = scmp.lt.s32.totalorder %s240_s17, %s240_s17 }
  0x2d   :  { %82 = vmatpush1.bf16.msra.mxu0 %v272_v4  ;;  %p319_p2 = scmp.ne.s32.totalorder %s240_s17, %s318_s18  ;;  %p324_p4 = scmp.lt.s32.totalorder %s318_s18, %s318_s18 }
  0x2f   :  { %p325_p5 = por %p324_p4, %p323_p3 }
  0x30   :  { %254 = vmatmul.mubr.msk.bf16.vlgmr.msra.gmra.mrb[0].mxu0 %vm75_vm0, %v273_v5 }
  0x31   :  { %p326_p6 = pnand %p325_p5, %p319_p2 }
 0x103   :  { %v113_v6 = vpop.f32.mrb[0].mxu0 }
 0x104   :  { %v115_v7 = vpop.f32.mrb[1].mxu0  ;;  %v149_v8 = vrot.slane %v113_v6, 2  ;;  %v124_v9 = vrot.slane %v113_v6, 1 }
 0x105   :  { %v117_v10 = vpop.f32.mrb[2].mxu0  ;;  %v176_v14 = vrot.slane %v115_v7, 3 }
 0x106   :  { %151 = vrot.lane.b32.xlu1 %v149_v8, %s353_s1  ;;  %126 = vrot.lane.b32.xlu0 %v124_v9, %s354_s12  ;;  %v119_v11 = vpop.f32.mrb[3].mxu0  ;;  %v125_v12 = vrot.slane %v117_v10, 1  ;;  %v150_v13 = vrot.slane %v117_v10, 2 }
 0x107   :  { %v177_v15 = vrot.slane %v119_v11, 3  ;;  %v255_v11 = vld [vmem:[%s428_s2] ss:$0 sm:$0xff] }
 0x10a   :  { %153 = vrot.lane.b32.xlu1 %v150_v13, %s353_s1  ;;  %128 = vrot.lane.b32.xlu0 %v125_v12, %s354_s12 }
 0x10e   :  { %178 = vrot.lane.b32.xlu0 %v176_v14, %s355_s13  ;;  %180 = vrot.lane.b32.xlu1 %v177_v15, %s355_s13 }
 0x178   :  { %v152_v16 = vpop.permute.xlu1 %151  ;;  %v127_v17 = vpop.permute.xlu0 %126 }
 0x179   :  { %v132_v18 = vadd.f32 %v127_v17, %v113_v6 }
 0x17b   :  { %v135_v19 = vsel %vm134_vm1, %v132_v18, -inf  ;;  %v157_v20 = vadd.f32 %v152_v16, %v132_v18 }
 0x17c   :  { %v136_v21 = vrot.slane %v135_v19, 4  ;;  %v154_v22 = vpop.permute.xlu1 %153  ;;  %v129_v23 = vpop.permute.xlu0 %128 }
 0x17d   :  { %v133_v24 = vadd.f32 %v129_v23, %v117_v10  ;;  %v160_v25 = vsel %vm159_vm2, %v157_v20, -inf }
 0x17e   :  { %v137_v26 = vmax.f32 %v135_v19, %v136_v21  ;;  %v161_v27 = vrot.slane %v160_v25, 4 }
 0x17f   :  { %v142_v28 = vsel %vm134_vm1, %v133_v24, -inf  ;;  %v158_v29 = vadd.f32 %v154_v22, %v133_v24 }
 0x180   :  { %v138_v30 = vrot.slane %v137_v26, 2  ;;  %v143_v31 = vrot.slane %v142_v28, 4  ;;  %v162_v32 = vmax.f32 %v160_v25, %v161_v27  ;;  %v179_v33 = vpop.permute.xlu0 %178  ;;  %v181_v34 = vpop.permute.xlu1 %180 }
 0x181   :  { %v184_v35 = vadd.f32 %v179_v33, %v157_v20  ;;  %v167_v36 = vsel %vm159_vm2, %v158_v29, -inf  ;;  %v185_v37 = vadd.f32 %v181_v34, %v158_v29 }
 0x182   :  { %v139_v38 = vmax.f32 %v137_v26, %v138_v30  ;;  %v144_v39 = vmax.f32 %v142_v28, %v143_v31  ;;  %v163_v40 = vrot.slane %v162_v32, 2  ;;  %v168_v41 = vrot.slane %v167_v36, 4 }
 0x183   :  { %v187_v42 = vsel %vm186_vm3, %v184_v35, -inf  ;;  %v194_v43 = vsel %vm186_vm3, %v185_v37, -inf }
 0x184   :  { %v145_v44 = vrot.slane %v144_v39, 2  ;;  %v188_v45 = vrot.slane %v187_v42, 4  ;;  %v164_v46 = vmax.f32 %v162_v32, %v163_v40  ;;  %v169_v47 = vmax.f32 %v167_v36, %v168_v41 }
 0x185   :  { %v195_v48 = vrot.slane %v194_v43, 4  ;;  %v140_v49 = vrot.slane %v139_v38, 1 }
 0x186   :  { %v146_v50 = vmax.f32 %v144_v39, %v145_v44  ;;  %v189_v51 = vmax.f32 %v187_v42, %v188_v45  ;;  %v170_v52 = vrot.slane %v169_v47, 2  ;;  %v165_v58 = vrot.slane %v164_v46, 1 }
 0x187   :  { %v196_v53 = vmax.f32 %v194_v43, %v195_v48  ;;  %v141_v59 = vmax.f32 %v139_v38, %v140_v49 }
 0x188   :  { %v147_v54 = vrot.slane %v146_v50, 1  ;;  %v190_v55 = vrot.slane %v189_v51, 2  ;;  %v171_v56 = vmax.f32 %v169_v47, %v170_v52  ;;  %v166_v3 = vmax.f32 %v164_v46, %v165_v58 }
 0x189   :  { %v197_v57 = vrot.slane %v196_v53, 2 }
 0x18a   :  { %v148_v60 = vmax.f32 %v146_v50, %v147_v54  ;;  %v191_v61 = vmax.f32 %v189_v51, %v190_v55  ;;  %v172_v63 = vrot.slane %v171_v56, 1 }
 0x18b   :  { %v198_v62 = vmax.f32 %v196_v53, %v197_v57 }
 0x18c   :  { %v192_v0 = vrot.slane %v191_v61, 1  ;;  %v204_v1 = vsel %vm203_vm4, %v148_v60, %v141_v59  ;;  %v173_v4 = vmax.f32 %v171_v56, %v172_v63 }
 0x18d   :  { %v199_v2 = vrot.slane %v198_v62, 1 }
 0x18e   :  { %v193_v5 = vmax.f32 %v191_v61, %v192_v0  ;;  %v208_v6 = vsel %vm203_vm4, %v173_v4, %v166_v3 }
 0x18f   :  { %v200_v7 = vmax.f32 %v198_v62, %v199_v2  ;;  %209 = vrot.lane.b32.xlu0 %v208_v6, %s354_s12 }
 0x191   :  { %v214_v8 = vsel %vm203_vm4, %v200_v7, %v193_v5 }
 0x192   :  { %215 = vrot.lane.b32.xlu1 %v214_v8, %s355_s13 }
 0x201   :  { %v210_v9 = vpop.permute.xlu0 %209 }
 0x202   :  { %v219_v10 = vsel %vm218_vm5, %v204_v1, %v210_v9 }
 0x204   :  { %v216_v12 = vpop.permute.xlu1 %215 }
 0x205   :  { %v220_v13 = vsel %vm75_vm0, %v219_v10, %v216_v12 }
 0x206   :  { %v222_v14 = vsel %vm221_vm6, %v220_v13, 0.0 }
 0x207   :  { %v230_v15 = vadd.f32 %v255_v11, %v222_v14 }
 0x209   :  { %v231_v16 = vmax.f32 %v230_v15, 0.0 }
 0x20b   :  { %232 = vst [vmem:[#allocation7] sm:$0x3] %v231_v16 }
 0x20c   :  { %329 = shalt.err (!%p326_p6)
}
 0x20d   :  { %s330_s2 = scalar_lea.hbm %s429_s3, 32 }
 0x20e   :  { %p331_p7 = scmp.ne.s32.totalorder %s429_s3, %s330_s2  ;;  %p334_p8 = scmp.lt.u32.totalorder %s330_s2, %s429_s3 }
 0x210   :  { %p336_p9 = pnand %p334_p8, %p331_p7 }
 0x212   :  { %339 = shalt.err (!%p336_p9)
}
 0x213   :  { %242 = dma.vmem_to_hbm [thread:$0]  %s240_s17, 32, %s429_s3, [#allocation4]  }
 0x214   :  { %344 = dma.done.wait [#allocation4], 32  }
 0x215   :  { %345 = vsyncadd [#allocation4], 4294967264 }
 0x216   :  { %246 = vsyncpa [#allocation3], 1 }
 0x217   :  { %247 = vsyncpa [#allocation6], 1 }
 0x218   :  { %248 = vsyncpa [#allocation4], 1 }

</bundles_post_ra>
